<compile_context>
chip_gen: v5e
topology: v5e:2x2
jax: 0.10.0
libtpu: 0.0.40
codegen_flags: <defaults>
</compile_context>

<pallas_src>
import jax
import jax.numpy as jnp
from jax.experimental import pallas as pl
from jax.experimental.pallas import tpu as pltpu


def _round_up(n, m):
    return ((n + m - 1) // m) * m


def _mlp_kernel(x_ref, w1_ref, b1_ref, w2_ref, b2_ref, w3_ref, b3_ref, o_ref):
    # fc1 + relu : (TB, K) @ (K, H1)
    h1 = jnp.dot(x_ref[...], w1_ref[...], preferred_element_type=jnp.float32)
    h1 = jnp.maximum(h1 + b1_ref[...], 0.0)
    # fc2 + relu : (TB, H1) @ (H1, H2)
    h2 = jnp.dot(h1, w2_ref[...], preferred_element_type=jnp.float32)
    h2 = jnp.maximum(h2 + b2_ref[...], 0.0)
    # fc3 : (TB, H2) @ (H2, 128) -- the padded weight keeps the MXU operand
    # lane-dense (same MXU cost as an N=1 matmul, only column 0 is non-zero),
    # but ONLY column 0 is stored, so HBM writeback is 4 B/row, not 512 B/row.
    o = jnp.dot(h2, w3_ref[...], preferred_element_type=jnp.float32)
    o_ref[...] = (o[:, :1] + b3_ref[0, 0]).astype(o_ref.dtype)


def init_params(key, pix):
    """nn.Linear-style init, U(-1/sqrt(fan_in), 1/sqrt(fan_in)).

    Weights are stored as (in_features, out_features), i.e. the transpose of
    PyTorch's (out, in) layout, so the kernel can do x @ W directly.
    """
    dims = [pix ** 2, (pix - 1) ** 2, (pix - 2) ** 2, 1]
    params = []
    for i in range(3):
        d_in, d_out = dims[i], dims[i + 1]
        key, kw, kb = jax.random.split(key, 3)
        bound = 1.0 / (d_in ** 0.5)
        w = jax.random.uniform(kw, (d_in, d_out), jnp.float32, -bound, bound)
        b = jax.random.uniform(kb, (1, d_out), jnp.float32, -bound, bound)
        params += [w, b]
    return tuple(params)


def pad_params(params, pix):
    """Zero-pad the hidden dims to multiples of 128 (done once, outside the
    kernel).  Exact: ReLU(0)=0 and the padded weight rows/cols are 0."""
    w1, b1, w2, b2, w3, b3 = params
    d_in, d1, d2 = pix ** 2, (pix - 1) ** 2, (pix - 2) ** 2
    H1, H2, HO = _round_up(d1, 128), _round_up(d2, 128), 128
    w1p = jnp.zeros((d_in, H1), jnp.float32).at[:, :d1].set(w1)
    b1p = jnp.zeros((1, H1), jnp.float32).at[:, :d1].set(b1)
    w2p = jnp.zeros((H1, H2), jnp.float32).at[:d1, :d2].set(w2)
    b2p = jnp.zeros((1, H2), jnp.float32).at[:, :d2].set(b2)
    w3p = jnp.zeros((H2, HO), jnp.float32).at[:d2, :1].set(w3)
    return w1p, b1p, w2p, b2p, w3p, b3   # b3 stays a (1, 1) scalar


def fcn_svrg_forward(x, padded_params, *, block_b=None):
    """Full FCNSVRG forward in one batch-tiled Pallas kernel. Returns (B, 1)."""
    w1, b1, w2, b2, w3, b3 = padded_params
    B, d_in = x.shape
    H1, H2, HO = w1.shape[1], w2.shape[1], w3.shape[1]

    if block_b is None:
        # Large tiles amortize the ~0.35us/grid-step overhead; capping at B/2
        # (rounded to sublanes) guarantees >= 2 parallel grid steps so both of
        # v7x's TensorCores get work (no-op on v5e/v6e).
        block_b = min(4096, _round_up(max(-(-B // 2), 8), 8))
    block_b = max(8, _round_up(min(block_b, _round_up(B, 8)), 8))
    n_blocks = pl.cdiv(B, block_b)
    # No jnp.pad of x: Pallas masks the ragged tail block (OOB reads are padded,
    # OOB writes past row B are dropped), so misaligned B costs no extra HBM pass.

    const = lambda a: pl.BlockSpec(a.shape, lambda i: (0,) * a.ndim)

    flops = 2 * B * (d_in * H1 + H1 * H2 + H2 * HO)
    bytes_accessed = 4 * (B * (d_in + 1)
                          + d_in * H1 + H1 * H2 + H2 * HO + H1 + H2 + 1)

    out = pl.pallas_call(
        _mlp_kernel,
        out_shape=jax.ShapeDtypeStruct((B, 1), jnp.float32),
        grid=(n_blocks,),
        in_specs=[
            pl.BlockSpec((block_b, d_in), lambda i: (i, 0)),    # x: batch-tiled
            const(w1), const(b1),                               # weights stay
            const(w2), const(b2),                               # VMEM-resident
            const(w3),
            pl.BlockSpec((1, 1), lambda i: (0, 0),
                         memory_space=pltpu.MemorySpace.SMEM),  # b3 scalar
        ],
        out_specs=pl.BlockSpec((block_b, 1), lambda i: (i, 0)), # narrow output
        compiler_params=pltpu.CompilerParams(
            dimension_semantics=("parallel",),
            vmem_limit_bytes=32 * 1024 * 1024),
        cost_estimate=pl.CostEstimate(flops=flops, transcendentals=0,
                                      bytes_accessed=bytes_accessed),
    )(x, w1, b1, w2, b2, w3, b3)
    return out


def reference_forward(x, params):
    w1, b1, w2, b2, w3, b3 = params
    h1 = jnp.maximum(x @ w1 + b1, 0.0)
    h2 = jnp.maximum(h1 @ w2 + b2, 0.0)
    return h2 @ w3 + b3


if __name__ == "__main__":
    PIX = 8          # fc1: 64 -> 49, fc2: 49 -> 36, fc3: 36 -> 1
    BATCH = 256      # small demo batch; auto-tiled as 2 grid steps of 128 rows

    key = jax.random.PRNGKey(0)
    key_x, key_p = jax.random.split(key)
    x = jax.random.normal(key_x, (BATCH, PIX ** 2), dtype=jnp.float32)

    params = init_params(key_p, PIX)            # exact nn.Linear-shaped params
    padded = pad_params(params, PIX)            # lane-dense, zero-padded copies

    out = fcn_svrg_forward(x, padded)           # default block_b -> 128, 2 steps
    jax.block_until_ready(out)

    ref = reference_forward(x, params)
    assert out.shape == (BATCH, 1), out.shape
    assert jnp.allclose(out, ref, atol=1e-4, rtol=1e-4), "mismatch vs reference"

    # init_hidden() in the PyTorch module is a no-op; nothing to implement.
    print("KERNEL_OK")
</pallas_src>

<mosaic_0001>
module attributes {stable_mosaic.version = 11 : i64} {
  func.func @_mlp_kernel(%arg0: i32, %arg1: memref<128x64xf32, #tpu.memory_space<vmem>>, %arg2: memref<64x128xf32, #tpu.memory_space<vmem>>, %arg3: memref<1x128xf32, #tpu.memory_space<vmem>>, %arg4: memref<128x128xf32, #tpu.memory_space<vmem>>, %arg5: memref<1x128xf32, #tpu.memory_space<vmem>>, %arg6: memref<128x128xf32, #tpu.memory_space<vmem>>, %arg7: memref<1x1xf32, #tpu.memory_space<smem>>, %arg8: memref<128x1xf32, #tpu.memory_space<vmem>>) attributes {dimension_semantics = [#tpu.dimension_semantics<parallel>], iteration_bounds = array<i64: 2>, scalar_prefetch = 0 : i64, scratch_operands = 0 : i64, tpu.core_type = #tpu.core_type<tc>, window_params = [{transform_indices = @transform_0, window_bounds = array<i64: 128, 64>}, {pipeline_mode = #tpu.pipeline_mode<synchronous>, transform_indices = @transform_1, window_bounds = array<i64: 64, 128>}, {pipeline_mode = #tpu.pipeline_mode<synchronous>, transform_indices = @transform_2, window_bounds = array<i64: 1, 128>}, {pipeline_mode = #tpu.pipeline_mode<synchronous>, transform_indices = @transform_3, window_bounds = array<i64: 128, 128>}, {pipeline_mode = #tpu.pipeline_mode<synchronous>, transform_indices = @transform_4, window_bounds = array<i64: 1, 128>}, {pipeline_mode = #tpu.pipeline_mode<synchronous>, transform_indices = @transform_5, window_bounds = array<i64: 128, 128>}, {transform_indices = @transform_6, window_bounds = array<i64: 1, 1>}, {transform_indices = @transform_7, window_bounds = array<i64: 128, 1>}]} {
    %c0 = arith.constant 0 : index
    %c0_0 = arith.constant 0 : index
    %0 = vector.load %arg1[%c0, %c0_0] : memref<128x64xf32, #tpu.memory_space<vmem>>, vector<128x64xf32>
    %c0_1 = arith.constant 0 : index
    %c0_2 = arith.constant 0 : index
    %1 = vector.load %arg2[%c0_1, %c0_2] : memref<64x128xf32, #tpu.memory_space<vmem>>, vector<64x128xf32>
    %cst = arith.constant dense<0.000000e+00> : vector<128x128xf32>
    %2 = tpu.matmul %0, %1, %cst {dimension_numbers = #tpu.dot_dimension_numbers<[1], [0], [0], [1], [0, 0, 1, 1], [], []>} : vector<128x64xf32>, vector<64x128xf32>, vector<128x128xf32> -> vector<128x128xf32>
    %c0_3 = arith.constant 0 : index
    %c0_4 = arith.constant 0 : index
    %3 = vector.load %arg3[%c0_3, %c0_4] : memref<1x128xf32, #tpu.memory_space<vmem>>, vector<1x128xf32>
    %4 = vector.broadcast %3 : vector<1x128xf32> to vector<128x128xf32>
    %5 = arith.addf %2, %4 : vector<128x128xf32>
    %cst_5 = arith.constant 0.000000e+00 : f32
    %6 = vector.broadcast %cst_5 : f32 to vector<128x128xf32>
    %7 = arith.maximumf %5, %6 : vector<128x128xf32>
    %c0_6 = arith.constant 0 : index
    %c0_7 = arith.constant 0 : index
    %8 = vector.load %arg4[%c0_6, %c0_7] : memref<128x128xf32, #tpu.memory_space<vmem>>, vector<128x128xf32>
    %cst_8 = arith.constant dense<0.000000e+00> : vector<128x128xf32>
    %9 = tpu.matmul %7, %8, %cst_8 {dimension_numbers = #tpu.dot_dimension_numbers<[1], [0], [0], [1], [0, 0, 1, 1], [], []>} : vector<128x128xf32>, vector<128x128xf32>, vector<128x128xf32> -> vector<128x128xf32>
    %c0_9 = arith.constant 0 : index
    %c0_10 = arith.constant 0 : index
    %10 = vector.load %arg5[%c0_9, %c0_10] : memref<1x128xf32, #tpu.memory_space<vmem>>, vector<1x128xf32>
    %11 = vector.broadcast %10 : vector<1x128xf32> to vector<128x128xf32>
    %12 = arith.addf %9, %11 : vector<128x128xf32>
    %cst_11 = arith.constant 0.000000e+00 : f32
    %13 = vector.broadcast %cst_11 : f32 to vector<128x128xf32>
    %14 = arith.maximumf %12, %13 : vector<128x128xf32>
    %c0_12 = arith.constant 0 : index
    %c0_13 = arith.constant 0 : index
    %15 = vector.load %arg6[%c0_12, %c0_13] : memref<128x128xf32, #tpu.memory_space<vmem>>, vector<128x128xf32>
    %cst_14 = arith.constant dense<0.000000e+00> : vector<128x128xf32>
    %16 = tpu.matmul %14, %15, %cst_14 {dimension_numbers = #tpu.dot_dimension_numbers<[1], [0], [0], [1], [0, 0, 1, 1], [], []>} : vector<128x128xf32>, vector<128x128xf32>, vector<128x128xf32> -> vector<128x128xf32>
    %17 = vector.extract_strided_slice %16 {offsets = [0, 0], sizes = [128, 1], strides = [1, 1]} : vector<128x128xf32> to vector<128x1xf32>
    %c0_15 = arith.constant 0 : index
    %c0_16 = arith.constant 0 : index
    %18 = memref.load %arg7[%c0_15, %c0_16] : memref<1x1xf32, #tpu.memory_space<smem>>
    %19 = vector.broadcast %18 : f32 to vector<128x1xf32>
    %20 = arith.addf %17, %19 : vector<128x1xf32>
    %c0_17 = arith.constant 0 : index
    %c0_18 = arith.constant 0 : index
    %21 = vector.load %arg8[%c0_17, %c0_18] : memref<128x1xf32, #tpu.memory_space<vmem>>, vector<128x1xf32>
    tpu.vector_store %arg8[%c0_17, %c0_18], %20 {strides = array<i32>} : memref<128x1xf32, #tpu.memory_space<vmem>>, vector<128x1xf32>,
    return
  }
  func.func @transform_0(%arg0: i32) -> (i32, i32) {
    %c0_i32 = arith.constant 0 : i32
    %c0_i32_0 = arith.constant 0 : i32
    return %arg0, %c0_i32 : i32, i32
  }
  func.func @transform_1(%arg0: i32) -> (i32, i32) {
    %c0_i32 = arith.constant 0 : i32
    %c0_i32_0 = arith.constant 0 : i32
    %c0_i32_1 = arith.constant 0 : i32
    return %c0_i32, %c0_i32_0 : i32, i32
  }
  func.func @transform_2(%arg0: i32) -> (i32, i32) {
    %c0_i32 = arith.constant 0 : i32
    %c0_i32_0 = arith.constant 0 : i32
    %c0_i32_1 = arith.constant 0 : i32
    return %c0_i32, %c0_i32_0 : i32, i32
  }
  func.func @transform_3(%arg0: i32) -> (i32, i32) {
    %c0_i32 = arith.constant 0 : i32
    %c0_i32_0 = arith.constant 0 : i32
    %c0_i32_1 = arith.constant 0 : i32
    return %c0_i32, %c0_i32_0 : i32, i32
  }
  func.func @transform_4(%arg0: i32) -> (i32, i32) {
    %c0_i32 = arith.constant 0 : i32
    %c0_i32_0 = arith.constant 0 : i32
    %c0_i32_1 = arith.constant 0 : i32
    return %c0_i32, %c0_i32_0 : i32, i32
  }
  func.func @transform_5(%arg0: i32) -> (i32, i32) {
    %c0_i32 = arith.constant 0 : i32
    %c0_i32_0 = arith.constant 0 : i32
    %c0_i32_1 = arith.constant 0 : i32
    return %c0_i32, %c0_i32_0 : i32, i32
  }
  func.func @transform_6(%arg0: i32) -> (i32, i32) {
    %c0_i32 = arith.constant 0 : i32
    %c0_i32_0 = arith.constant 0 : i32
    %c0_i32_1 = arith.constant 0 : i32
    return %c0_i32, %c0_i32_0 : i32, i32
  }
  func.func @transform_7(%arg0: i32) -> (i32, i32) {
    %c0_i32 = arith.constant 0 : i32
    %c0_i32_0 = arith.constant 0 : i32
    return %arg0, %c0_i32 : i32, i32
  }
}

</mosaic_0001>

<bundles_post_ra>
// kernel: tpu_custom_call.1
= control target key start
LH: loop header
LB: loop body
LE: loop exit
PB: predicated region body
PF: predicated region fallthrough
CT: control target
= control target key end

     0   :  { %s834_s26 = smov 0   ;;  %s1088_s0 = inlined_call_operand.vmem [shape: f32[256,64], index: 0, kind: input, shape index: {}]   ;;  %s1089_s1 = inlined_call_operand.vmem [shape: f32[64,128], index: 1, kind: input, shape index: {}]   ;;  %s1090_s2 = inlined_call_operand.vmem [shape: f32[1,128], index: 2, kind: input, shape index: {}]   ;;  %s1091_s3 = inlined_call_operand.vmem [shape: f32[128,128], index: 3, kind: input, shape index: {}]   ;;  %s1092_s4 = inlined_call_operand.vmem [shape: f32[1,128], index: 4, kind: input, shape index: {}]   ;;  %s1093_s5 = inlined_call_operand.vmem [shape: f32[128,128], index: 5, kind: input, shape index: {}]   ;;  %s1094_s6 = inlined_call_operand.<no memory space> [shape: f32[1,1], index: 6, kind: input, shape index: {}]   ;;  %s1095_s7 = inlined_call_operand.vmem [shape: f32[256,1], index: 7, kind: output, shape index: {}]  }
   0x1   :  { %12 = sst [smem:[#allocation2]] %s1094_s6 }
   0x2 LB: > { %s714_s27 = sadd.s32 4294967295, %s789_s26   ;;  %p718_p0 = scmp.ge.s32.totalorder %s789_s26, 1  ;;  %s789_s26 = sphi %s834_s26, %s18_s26  }
   0x3   : > { %p239_p1 = scmp.lt.s32.totalorder %s789_s26, 3 }
   0x5   : > { %p240_p2 = pnand %p718_p0, %p239_p1 }
   0x6   : > { %s719_s8 = sshll.u32 (!%p240_p2), %s714_s27, 4  ;;  %s623_s9 = sld [smem:[#allocation2]] (!%p240_p2) }
   0x7   : > { %243 = sbr.rel (%p240_p2) target bundleno = 549 (0x225), region = 48  ;;  %p272_p3 = scmp.lt.s32.totalorder (!%p240_p2), %s719_s8, 31 }
   0xc   : > { %v306_v0 = vld [vmem:[%s1089_s1 + $0x38] sm:$0xff]  ;;  %v305_v1 = vld [vmem:[%s1089_s1 + $0x30] sm:$0xff]  ;;  %v304_v2 = vld [vmem:[%s1089_s1 + $0x28] sm:$0xff]  ;;  %s1097_s8 = smov (!%p272_p3, %s719_s8), 31  ;;  %vm311_vm0 = vcmask 523264   ;;  %vm641_vm1 = vcmask 7168  }
   0xd   : > { %368 = vmatpush.msra.mxu0 %v306_v0  ;;  %v303_v3 = vld [vmem:[%s1089_s1 + $0x20] sm:$0xff]  ;;  %v302_v4 = vld [vmem:[%s1089_s1 + $0x18] sm:$0xff]  ;;  %s720_s15 = sshll.u32 %s1097_s8, 3  ;;  %v301_v5 = vld [vmem:[%s1089_s1 + $0x10] sm:$0xff] }
   0xe   : > { %v300_v6 = vld [vmem:[%s1089_s1 + $0x8] sm:$0xff]  ;;  %s871_s22 = scalar_lea.vmem %s1088_s0, %s720_s15  ;;  %v299_v7 = vld [vmem:[%s1089_s1] sm:$0xff]  ;;  %v456_v17 = vld [vmem:[%s1091_s3 + $0x78] sm:$0xff]  ;;  %s1051_s12 = scalar_lea.vmem %s1095_s7, %s720_s15 }
   0xf   : > { %369 = vmatpush.msra.mxu0 %v305_v1  ;;  %v283_v8 = vld [vmem:[%s871_s22] sm:$0xff]  ;;  %v284_v9 = vld [vmem:[%s871_s22 + $0x8] sm:$0xff]  ;;  %v285_v10 = vld [vmem:[%s871_s22 + $0x10] sm:$0xff]  ;;  %461 = vmatpush.msra.mxu1 %v456_v17 }
  0x10   : > { %v286_v11 = vld [vmem:[%s871_s22 + $0x18] sm:$0xff]  ;;  %v287_v12 = vld [vmem:[%s871_s22 + $0x20] sm:$0xff]  ;;  %v288_v13 = vld [vmem:[%s871_s22 + $0x28] sm:$0xff]  ;;  %741 = vmatpush.msra.mxu3 %v456_v17 }
  0x11   : > { %370 = vmatpush.msra.mxu0 %v304_v2  ;;  %v289_v14 = vld [vmem:[%s871_s22 + $0x30] sm:$0xff]  ;;  %v290_v15 = vld [vmem:[%s871_s22 + $0x38] sm:$0xff]  ;;  %v291_v16 = vld [vmem:[%s871_s22 + $0x40] sm:$0xff] }
  0x12   : > { %v455_v18 = vld [vmem:[%s1091_s3 + $0x70] sm:$0xff]  ;;  %v454_v19 = vld [vmem:[%s1091_s3 + $0x68] sm:$0xff]  ;;  %v453_v21 = vld [vmem:[%s1091_s3 + $0x60] sm:$0xff] }
  0x13   : > { %371 = vmatpush.msra.mxu0 %v303_v3  ;;  %462 = vmatpush.msra.mxu1 %v455_v18  ;;  %v292_v20 = vld [vmem:[%s871_s22 + $0x48] sm:$0xff]  ;;  %v452_v22 = vld [vmem:[%s1091_s3 + $0x58] sm:$0xff]  ;;  %v451_v23 = vld [vmem:[%s1091_s3 + $0x50] sm:$0xff] }
  0x14   : > { %742 = vmatpush.msra.mxu3 %v455_v18  ;;  %v450_v24 = vld [vmem:[%s1091_s3 + $0x48] sm:$0xff]  ;;  %v293_v25 = vld [vmem:[%s871_s22 + $0x50] sm:$0xff]  ;;  %v449_v26 = vld [vmem:[%s1091_s3 + $0x40] sm:$0xff] }
  0x15   : > { %372 = vmatpush.msra.mxu0 %v302_v4  ;;  %463 = vmatpush.msra.mxu1 %v454_v19  ;;  %v448_v27 = vld [vmem:[%s1091_s3 + $0x38] sm:$0xff]  ;;  %v447_v28 = vld [vmem:[%s1091_s3 + $0x30] sm:$0xff]  ;;  %v446_v29 = vld [vmem:[%s1091_s3 + $0x28] sm:$0xff] }
  0x16   : > { %743 = vmatpush.msra.mxu3 %v454_v19  ;;  %v294_v30 = vld [vmem:[%s871_s22 + $0x58] sm:$0xff]  ;;  %v445_v31 = vld [vmem:[%s1091_s3 + $0x20] sm:$0xff]  ;;  %v443_v33 = vld [vmem:[%s1091_s3 + $0x10] sm:$0xff] }
  0x17   : > { %373 = vmatpush.msra.mxu0 %v301_v5  ;;  %464 = vmatpush.msra.mxu1 %v453_v21  ;;  %v444_v32 = vld [vmem:[%s1091_s3 + $0x18] sm:$0xff]  ;;  %v295_v34 = vld [vmem:[%s871_s22 + $0x60] sm:$0xff]  ;;  %v442_v35 = vld [vmem:[%s1091_s3 + $0x8] sm:$0xff] }
  0x18   : > { %744 = vmatpush.msra.mxu3 %v453_v21  ;;  %v441_v36 = vld [vmem:[%s1091_s3] sm:$0xff]  ;;  %v296_v37 = vld [vmem:[%s871_s22 + $0x68] sm:$0xff]  ;;  %v297_v38 = vld [vmem:[%s871_s22 + $0x70] sm:$0xff] }
  0x19   : > { %374 = vmatpush.msra.mxu0 %v300_v6  ;;  %465 = vmatpush.msra.mxu1 %v452_v22  ;;  %v298_v39 = vld [vmem:[%s871_s22 + $0x78] sm:$0xff]  ;;  %v959_v40 = vld [vmem:[%s1090_s2] ss:$0 sm:$0xff]  ;;  %v548_v21 = vld [vmem:[%s1093_s5 + $0x30] sm:$0xff] }
  0x1a   : > { %745 = vmatpush.msra.mxu3 %v452_v22  ;;  %v557_v4 = vld [vmem:[%s1093_s5 + $0x78] sm:$0xff]  ;;  %v550_v17 = vld [vmem:[%s1093_s5 + $0x40] sm:$0xff] }
  0x1b   : > { %375 = vmatpush.msra.mxu0 %v299_v7  ;;  %466 = vmatpush.msra.mxu1 %v451_v23  ;;  %v556_v7 = vld [vmem:[%s1093_s5 + $0x70] sm:$0xff]  ;;  %v549_v18 = vld [vmem:[%s1093_s5 + $0x38] sm:$0xff] }
  0x1c   : > { %723 = vmatmul.msk.f32.vlgmr.msra.gmra.mxu0 %vm311_vm0, %v283_v8  ;;  %746 = vmatpush.msra.mxu3 %v451_v23  ;;  %v547_v23 = vld [vmem:[%s1093_s5 + $0x28] sm:$0xff] }
  0x1d   : > { %467 = vmatpush.msra.mxu1 %v450_v24  ;;  %558 = vmatpush.msra.mxu2 %v557_v4 }
  0x1e   : > { %747 = vmatpush.msra.mxu3 %v450_v24  ;;  %v546_v24 = vld [vmem:[%s1093_s5 + $0x20] sm:$0xff] }
  0x1f   : > { %468 = vmatpush.msra.mxu1 %v449_v26  ;;  %559 = vmatpush.msra.mxu2 %v556_v7 }
  0x20   : > { %748 = vmatpush.msra.mxu3 %v449_v26 }
  0x21   : > { %469 = vmatpush.msra.mxu1 %v448_v27 }
  0x22   : > { %749 = vmatpush.msra.mxu3 %v448_v27 }
  0x23   : > { %470 = vmatpush.msra.mxu1 %v447_v28 }
  0x24   : > { %724 = vmatmul.msk.f32.gmra.mxu0 %vm311_vm0, %v284_v9  ;;  %750 = vmatpush.msra.mxu3 %v447_v28  ;;  %v555_v9 = vld [vmem:[%s1093_s5 + $0x68] sm:$0xff]  ;;  %v544_v28 = vld [vmem:[%s1093_s5 + $0x10] sm:$0xff] }
  0x25   : > { %471 = vmatpush.msra.mxu1 %v446_v29  ;;  %560 = vmatpush.msra.mxu2 %v555_v9 }
  0x26   : > { %751 = vmatpush.msra.mxu3 %v446_v29 }
  0x27   : > { %472 = vmatpush.msra.mxu1 %v445_v31 }
  0x28   : > { %752 = vmatpush.msra.mxu3 %v445_v31  ;;  %v542_v31 = vld [vmem:[%s1093_s5] sm:$0xff] }
  0x29   : > { %473 = vmatpush.msra.mxu1 %v444_v32 }
  0x2a   : > { %753 = vmatpush.msra.mxu3 %v444_v32 }
  0x2b   : > { %474 = vmatpush.msra.mxu1 %v443_v33 }
  0x2c   : > { %725 = vmatmul.msk.f32.gmra.mxu0 %vm311_vm0, %v285_v10  ;;  %754 = vmatpush.msra.mxu3 %v443_v33  ;;  %v554_v10 = vld [vmem:[%s1093_s5 + $0x60] sm:$0xff] }
  0x2d   : > { %475 = vmatpush.msra.mxu1 %v442_v35  ;;  %561 = vmatpush.msra.mxu2 %v554_v10 }
  0x2e   : > { %755 = vmatpush.msra.mxu3 %v442_v35 }
  0x2f   : > { %476 = vmatpush.msra.mxu1 %v441_v36 }
  0x30   : > { %756 = vmatpush.msra.mxu3 %v441_v36 }
  0x32   : > { %757 = vmatpush.msrb.mxu3 %v557_v4 }
  0x34   : > { %726 = vmatmul.msk.f32.gmra.mxu0 %vm311_vm0, %v286_v11  ;;  %758 = vmatpush.msrb.mxu3 %v556_v7  ;;  %v553_v11 = vld [vmem:[%s1093_s5 + $0x58] sm:$0xff] }
  0x35   : > { %562 = vmatpush.msra.mxu2 %v553_v11 }
  0x36   : > { %759 = vmatpush.msrb.mxu3 %v555_v9 }
  0x38   : > { %760 = vmatpush.msrb.mxu3 %v554_v10 }
  0x3a   : > { %761 = vmatpush.msrb.mxu3 %v553_v11 }
  0x3c   : > { %727 = vmatmul.msk.f32.gmra.mxu0 %vm311_vm0, %v287_v12 }
  0x44   : > { %728 = vmatmul.msk.f32.gmra.mxu0 %vm311_vm0, %v288_v13 }
  0x4c   : > { %729 = vmatmul.msk.f32.gmra.mxu0 %vm311_vm0, %v289_v14  ;;  %v552_v14 = vld [vmem:[%s1093_s5 + $0x50] sm:$0xff] }
  0x4d   : > { %563 = vmatpush.msra.mxu2 %v552_v14  ;;  %762 = vmatpush.msrb.mxu3 %v552_v14 }
  0x54   : > { %730 = vmatmul.msk.f32.gmra.mxu0 %vm311_vm0, %v290_v15 }
  0x5c   : > { %731 = vmatmul.msk.f32.gmra.mxu0 %vm311_vm0, %v291_v16  ;;  %v551_v16 = vld [vmem:[%s1093_s5 + $0x48] sm:$0xff] }
  0x5d   : > { %564 = vmatpush.msra.mxu2 %v551_v16  ;;  %763 = vmatpush.msrb.mxu3 %v551_v16 }
  0x5f   : > { %565 = vmatpush.msra.mxu2 %v550_v17  ;;  %764 = vmatpush.msrb.mxu3 %v550_v17 }
  0x61   : > { %566 = vmatpush.msra.mxu2 %v549_v18  ;;  %765 = vmatpush.msrb.mxu3 %v549_v18 }
  0x63   : > { %567 = vmatpush.msra.mxu2 %v548_v21  ;;  %766 = vmatpush.msrb.mxu3 %v548_v21 }
  0x64   : > { %732 = vmatmul.msk.f32.gmra.mxu0 %vm311_vm0, %v292_v20 }
  0x65   : > { %568 = vmatpush.msra.mxu2 %v547_v23  ;;  %767 = vmatpush.msrb.mxu3 %v547_v23 }
  0x67   : > { %569 = vmatpush.msra.mxu2 %v546_v24  ;;  %768 = vmatpush.msrb.mxu3 %v546_v24 }
  0x6c   : > { %733 = vmatmul.msk.f32.gmra.mxu0 %vm311_vm0, %v293_v25  ;;  %v545_v25 = vld [vmem:[%s1093_s5 + $0x18] sm:$0xff] }
  0x6d   : > { %570 = vmatpush.msra.mxu2 %v545_v25  ;;  %769 = vmatpush.msrb.mxu3 %v545_v25 }
  0x6f   : > { %571 = vmatpush.msra.mxu2 %v544_v28  ;;  %770 = vmatpush.msrb.mxu3 %v544_v28 }
  0x74   : > { %734 = vmatmul.msk.f32.gmra.mxu0 %vm311_vm0, %v294_v30  ;;  %v543_v30 = vld [vmem:[%s1093_s5 + $0x8] sm:$0xff] }
  0x75   : > { %572 = vmatpush.msra.mxu2 %v543_v30  ;;  %771 = vmatpush.msrb.mxu3 %v543_v30 }
  0x77   : > { %573 = vmatpush.msra.mxu2 %v542_v31  ;;  %772 = vmatpush.msrb.mxu3 %v542_v31 }
  0x7c   : > { %735 = vmatmul.msk.f32.gmra.mxu0 %vm311_vm0, %v295_v34 }
  0x84   : > { %736 = vmatmul.msk.f32.gmra.mxu0 %vm311_vm0, %v296_v37 }
  0x8c   : > { %737 = vmatmul.msk.f32.gmra.mxu0 %vm311_vm0, %v297_v38 }
  0x94   : > { %738 = vmatmul.msk.f32.gmra.mxu0 %vm311_vm0, %v298_v39 }
  0x99   : > { %v377_v41 = vpop.f32.mrf.mxu0 }
  0x9a   : > { %v378_v42 = vadd.f32 %v959_v40, %v377_v41 }
  0x9c   : > { %v425_v43 = vmax.f32 %v378_v42, 0.0  ;;  %v1028_v42 = vld [vmem:[%s1092_s4] ss:$0 sm:$0xff] }
  0x9e   : > { %477 = vmatmul.f32.vlgmr.msra.gmra.mxu1 %v425_v43 }
  0xa1   : > { %v380_v44 = vpop.f32.mrf.mxu0 }
  0xa2   : > { %v381_v45 = vadd.f32 %v959_v40, %v380_v44 }
  0xa4   : > { %v426_v46 = vmax.f32 %v381_v45, 0.0 }
  0xa6   : > { %480 = vmatmul.f32.gmra.mxu1 %v426_v46 }
  0xa9   : > { %v383_v47 = vpop.f32.mrf.mxu0 }
  0xaa   : > { %v384_v48 = vadd.f32 %v959_v40, %v383_v47 }
  0xac   : > { %v427_v49 = vmax.f32 %v384_v48, 0.0 }
  0xae   : > { %483 = vmatmul.f32.gmra.mxu1 %v427_v49 }
  0xb1   : > { %v386_v50 = vpop.f32.mrf.mxu0 }
  0xb2   : > { %v387_v51 = vadd.f32 %v959_v40, %v386_v50 }
  0xb4   : > { %v428_v52 = vmax.f32 %v387_v51, 0.0 }
  0xb6   : > { %486 = vmatmul.f32.gmra.mxu1 %v428_v52 }
  0xb9   : > { %v389_v53 = vpop.f32.mrf.mxu0 }
  0xba   : > { %v390_v54 = vadd.f32 %v959_v40, %v389_v53 }
  0xbc   : > { %v429_v55 = vmax.f32 %v390_v54, 0.0 }
  0xbe   : > { %489 = vmatmul.f32.gmra.mxu1 %v429_v55 }
  0xc1   : > { %v392_v56 = vpop.f32.mrf.mxu0 }
  0xc2   : > { %v393_v57 = vadd.f32 %v959_v40, %v392_v56 }
  0xc4   : > { %v430_v58 = vmax.f32 %v393_v57, 0.0 }
  0xc6   : > { %492 = vmatmul.f32.gmra.mxu1 %v430_v58 }
  0xc9   : > { %v395_v59 = vpop.f32.mrf.mxu0 }
  0xca   : > { %v396_v60 = vadd.f32 %v959_v40, %v395_v59 }
  0xcc   : > { %v431_v61 = vmax.f32 %v396_v60, 0.0 }
  0xce   : > { %495 = vmatmul.f32.gmra.mxu1 %v431_v61 }
  0xd1   : > { %v398_v62 = vpop.f32.mrf.mxu0 }
  0xd2   : > { %v399_v63 = vadd.f32 %v959_v40, %v398_v62 }
  0xd4   : > { %v432_v0 = vmax.f32 %v399_v63, 0.0 }
  0xd6   : > { %498 = vmatmul.f32.gmra.mxu1 %v432_v0 }
  0xd9   : > { %v401_v1 = vpop.f32.mrf.mxu0 }
  0xda   : > { %v402_v2 = vadd.f32 %v959_v40, %v401_v1 }
  0xdc   : > { %v433_v3 = vmax.f32 %v402_v2, 0.0 }
  0xde   : > { %501 = vmatmul.f32.gmra.mxu1 %v433_v3 }
  0xe1   : > { %v404_v5 = vpop.f32.mrf.mxu0 }
  0xe2   : > { %v405_v6 = vadd.f32 %v959_v40, %v404_v5 }
  0xe4   : > { %v434_v8 = vmax.f32 %v405_v6, 0.0 }
  0xe6   : > { %504 = vmatmul.f32.gmra.mxu1 %v434_v8 }
  0xe9   : > { %v407_v12 = vpop.f32.mrf.mxu0 }
  0xea   : > { %v408_v13 = vadd.f32 %v959_v40, %v407_v12 }
  0xec   : > { %v435_v15 = vmax.f32 %v408_v13, 0.0 }
  0xee   : > { %507 = vmatmul.f32.gmra.mxu1 %v435_v15 }
  0xf1   : > { %v410_v19 = vpop.f32.mrf.mxu0 }
  0xf2   : > { %v411_v20 = vadd.f32 %v959_v40, %v410_v19 }
  0xf4   : > { %v436_v22 = vmax.f32 %v411_v20, 0.0 }
  0xf6   : > { %510 = vmatmul.f32.gmra.mxu1 %v436_v22 }
  0xf9   : > { %v413_v26 = vpop.f32.mrf.mxu0 }
  0xfa   : > { %v414_v27 = vadd.f32 %v959_v40, %v413_v26  ;;  %v624_v26 = vstv %s623_s9 }
  0xfc   : > { %v437_v29 = vmax.f32 %v414_v27, 0.0 }
  0xfe   : > { %513 = vmatmul.f32.vlgmr.msra.gmra.mxu3 %v437_v29 }
 0x101   : > { %v416_v32 = vpop.f32.mrf.mxu0 }
 0x102   : > { %v417_v33 = vadd.f32 %v959_v40, %v416_v32 }
 0x104   : > { %v438_v34 = vmax.f32 %v417_v33, 0.0 }
 0x106   : > { %516 = vmatmul.f32.gmra.mxu3 %v438_v34 }
 0x109   : > { %v419_v35 = vpop.f32.mrf.mxu0 }
 0x10a   : > { %v420_v36 = vadd.f32 %v959_v40, %v419_v35 }
 0x10c   : > { %v439_v37 = vmax.f32 %v420_v36, 0.0 }
 0x10e   : > { %519 = vmatmul.f32.gmra.mxu3 %v439_v37 }
 0x111   : > { %v422_v38 = vpop.f32.mrf.mxu0 }
 0x112   : > { %v423_v39 = vadd.f32 %v959_v40, %v422_v38 }
 0x114   : > { %v440_v41 = vmax.f32 %v423_v39, 0.0 }
 0x116   : > { %522 = vmatmul.f32.gmra.mxu3 %v440_v41 }
 0x11b   : > { %v478_v43 = vpop.f32.mrf.mxu1 }
 0x11c   : > { %v479_v44 = vadd.f32 %v1028_v42, %v478_v43 }
 0x11e   : > { %v526_v45 = vmax.f32 %v479_v44, 0.0 }
 0x120   : > { %574 = vmatmul.f32.vlgmr.msra.gmra.mxu2 %v526_v45 }
 0x123   : > { %v481_v46 = vpop.f32.mrf.mxu1 }
 0x124   : > { %v482_v47 = vadd.f32 %v1028_v42, %v481_v46 }
 0x126   : > { %v527_v48 = vmax.f32 %v482_v47, 0.0 }
 0x128   : > { %577 = vmatmul.f32.gmra.mxu2 %v527_v48 }
 0x12b   : > { %v484_v49 = vpop.f32.mrf.mxu1 }
 0x12c   : > { %v485_v40 = vadd.f32 %v1028_v42, %v484_v49 }
 0x12e   : > { %v528_v50 = vmax.f32 %v485_v40, 0.0 }
 0x130   : > { %580 = vmatmul.f32.gmra.mxu2 %v528_v50 }
 0x133   : > { %v487_v51 = vpop.f32.mrf.mxu1 }
 0x134   : > { %v488_v52 = vadd.f32 %v1028_v42, %v487_v51 }
 0x136   : > { %v529_v53 = vmax.f32 %v488_v52, 0.0 }
 0x138   : > { %583 = vmatmul.f32.gmra.mxu2 %v529_v53 }
 0x13b   : > { %v490_v54 = vpop.f32.mrf.mxu1 }
 0x13c   : > { %v491_v55 = vadd.f32 %v1028_v42, %v490_v54 }
 0x13e   : > { %v530_v56 = vmax.f32 %v491_v55, 0.0 }
 0x140   : > { %586 = vmatmul.f32.gmra.mxu2 %v530_v56 }
 0x143   : > { %v493_v57 = vpop.f32.mrf.mxu1 }
 0x144   : > { %v494_v58 = vadd.f32 %v1028_v42, %v493_v57 }
 0x146   : > { %v531_v59 = vmax.f32 %v494_v58, 0.0 }
 0x148   : > { %589 = vmatmul.f32.gmra.mxu2 %v531_v59 }
 0x14b   : > { %v496_v60 = vpop.f32.mrf.mxu1 }
 0x14c   : > { %v497_v61 = vadd.f32 %v1028_v42, %v496_v60 }
 0x14e   : > { %v532_v62 = vmax.f32 %v497_v61, 0.0 }
 0x150   : > { %592 = vmatmul.f32.gmra.mxu2 %v532_v62 }
 0x153   : > { %v499_v63 = vpop.f32.mrf.mxu1 }
 0x154   : > { %v500_v0 = vadd.f32 %v1028_v42, %v499_v63 }
 0x156   : > { %v533_v1 = vmax.f32 %v500_v0, 0.0 }
 0x158   : > { %595 = vmatmul.f32.gmra.mxu2 %v533_v1 }
 0x15b   : > { %v502_v2 = vpop.f32.mrf.mxu1 }
 0x15c   : > { %v503_v3 = vadd.f32 %v1028_v42, %v502_v2 }
 0x15e   : > { %v534_v4 = vmax.f32 %v503_v3, 0.0 }
 0x160   : > { %598 = vmatmul.f32.gmra.mxu2 %v534_v4 }
 0x163   : > { %v505_v5 = vpop.f32.mrf.mxu1 }
 0x164   : > { %v506_v6 = vadd.f32 %v1028_v42, %v505_v5 }
 0x166   : > { %v535_v7 = vmax.f32 %v506_v6, 0.0 }
 0x168   : > { %601 = vmatmul.f32.gmra.mxu2 %v535_v7 }
 0x16b   : > { %v508_v8 = vpop.f32.mrf.mxu1 }
 0x16c   : > { %v509_v9 = vadd.f32 %v1028_v42, %v508_v8 }
 0x16e   : > { %v536_v10 = vmax.f32 %v509_v9, 0.0 }
 0x170   : > { %604 = vmatmul.f32.gmra.mxu2 %v536_v10 }
 0x173   : > { %v511_v11 = vpop.f32.mrf.mxu1 }
 0x174   : > { %v512_v12 = vadd.f32 %v1028_v42, %v511_v11 }
 0x176   : > { %v537_v13 = vmax.f32 %v512_v12, 0.0 }
 0x178   : > { %607 = vmatmul.f32.gmra.mxu2 %v537_v13 }
 0x181   : > { %v514_v14 = vpop.f32.mrf.mxu3 }
 0x182   : > { %v515_v15 = vadd.f32 %v1028_v42, %v514_v14 }
 0x184   : > { %v538_v16 = vmax.f32 %v515_v15, 0.0 }
 0x186   : > { %610 = vmatmul.f32.vlgmr.msrb.gmra.mxu3 %v538_v16 }
 0x189   : > { %v517_v17 = vpop.f32.mrf.mxu3 }
 0x18a   : > { %v518_v18 = vadd.f32 %v1028_v42, %v517_v17 }
 0x18c   : > { %v539_v19 = vmax.f32 %v518_v18, 0.0 }
 0x18e   : > { %613 = vmatmul.f32.gmra.mxu3 %v539_v19 }
 0x191   : > { %v520_v20 = vpop.f32.mrf.mxu3 }
 0x192   : > { %v521_v21 = vadd.f32 %v1028_v42, %v520_v20 }
 0x194   : > { %v540_v22 = vmax.f32 %v521_v21, 0.0 }
 0x196   : > { %616 = vmatmul.f32.gmra.mxu3 %v540_v22 }
 0x199   : > { %v523_v23 = vpop.f32.mrf.mxu3 }
 0x19a   : > { %v524_v24 = vadd.f32 %v1028_v42, %v523_v23 }
 0x19c   : > { %v541_v25 = vmax.f32 %v524_v24, 0.0 }
 0x19e   : > { %619 = vmatmul.f32.gmra.mxu3 %v541_v25 }
 0x1a3   : > { %v575_v27 = vpop.f32.mrf.mxu2 }
 0x1a4   : > { %v625_v28 = vadd.f32 %v624_v26, %v575_v27 }
 0x1a6   : > { %642 = vst.msk [vmem:[%s1051_s12] sm:$0xff] %vm641_vm1, %v625_v28 }
 0x1ab   : > { %v578_v29 = vpop.f32.mrf.mxu2 }
 0x1ac   : > { %v626_v30 = vadd.f32 %v624_v26, %v578_v29 }
 0x1ae   : > { %643 = vst.msk [vmem:[%s1051_s12 + $0x8] sm:$0xff] %vm641_vm1, %v626_v30 }
 0x1b3   : > { %v581_v31 = vpop.f32.mrf.mxu2 }
 0x1b4   : > { %v627_v32 = vadd.f32 %v624_v26, %v581_v31 }
 0x1b6   : > { %644 = vst.msk [vmem:[%s1051_s12 + $0x10] sm:$0xff] %vm641_vm1, %v627_v32 }
 0x1bb   : > { %v584_v33 = vpop.f32.mrf.mxu2 }
 0x1bc   : > { %v628_v34 = vadd.f32 %v624_v26, %v584_v33 }
 0x1be   : > { %645 = vst.msk [vmem:[%s1051_s12 + $0x18] sm:$0xff] %vm641_vm1, %v628_v34 }
 0x1c3   : > { %v587_v35 = vpop.f32.mrf.mxu2 }
 0x1c4   : > { %v629_v36 = vadd.f32 %v624_v26, %v587_v35 }
 0x1c6   : > { %646 = vst.msk [vmem:[%s1051_s12 + $0x20] sm:$0xff] %vm641_vm1, %v629_v36 }
 0x1cb   : > { %v590_v37 = vpop.f32.mrf.mxu2 }
 0x1cc   : > { %v630_v38 = vadd.f32 %v624_v26, %v590_v37 }
 0x1ce   : > { %647 = vst.msk [vmem:[%s1051_s12 + $0x28] sm:$0xff] %vm641_vm1, %v630_v38 }
 0x1d3   : > { %v593_v39 = vpop.f32.mrf.mxu2 }
 0x1d4   : > { %v631_v41 = vadd.f32 %v624_v26, %v593_v39 }
 0x1d6   : > { %648 = vst.msk [vmem:[%s1051_s12 + $0x30] sm:$0xff] %vm641_vm1, %v631_v41 }
 0x1db   : > { %v596_v42 = vpop.f32.mrf.mxu2 }
 0x1dc   : > { %v632_v43 = vadd.f32 %v624_v26, %v596_v42 }
 0x1de   : > { %649 = vst.msk [vmem:[%s1051_s12 + $0x38] sm:$0xff] %vm641_vm1, %v632_v43 }
 0x1e3   : > { %v599_v44 = vpop.f32.mrf.mxu2 }
 0x1e4   : > { %v633_v45 = vadd.f32 %v624_v26, %v599_v44 }
 0x1e6   : > { %650 = vst.msk [vmem:[%s1051_s12 + $0x40] sm:$0xff] %vm641_vm1, %v633_v45 }
 0x1eb   : > { %v602_v46 = vpop.f32.mrf.mxu2 }
 0x1ec   : > { %v634_v47 = vadd.f32 %v624_v26, %v602_v46 }
 0x1ee   : > { %651 = vst.msk [vmem:[%s1051_s12 + $0x48] sm:$0xff] %vm641_vm1, %v634_v47 }
 0x1f3   : > { %v605_v48 = vpop.f32.mrf.mxu2 }
 0x1f4   : > { %v635_v49 = vadd.f32 %v624_v26, %v605_v48 }
 0x1f6   : > { %652 = vst.msk [vmem:[%s1051_s12 + $0x50] sm:$0xff] %vm641_vm1, %v635_v49 }
 0x1fb   : > { %v608_v40 = vpop.f32.mrf.mxu2 }
 0x1fc   : > { %v636_v50 = vadd.f32 %v624_v26, %v608_v40 }
 0x1fe   : > { %653 = vst.msk [vmem:[%s1051_s12 + $0x58] sm:$0xff] %vm641_vm1, %v636_v50 }
 0x209   : > { %v611_v51 = vpop.f32.mrf.mxu3 }
 0x20a   : > { %v637_v52 = vadd.f32 %v624_v26, %v611_v51 }
 0x20c   : > { %654 = vst.msk [vmem:[%s1051_s12 + $0x60] sm:$0xff] %vm641_vm1, %v637_v52 }
 0x211   : > { %v614_v53 = vpop.f32.mrf.mxu3 }
 0x212   : > { %v638_v54 = vadd.f32 %v624_v26, %v614_v53 }
 0x214   : > { %655 = vst.msk [vmem:[%s1051_s12 + $0x68] sm:$0xff] %vm641_vm1, %v638_v54 }
 0x219   : > { %v617_v55 = vpop.f32.mrf.mxu3 }
 0x21a   : > { %v639_v56 = vadd.f32 %v624_v26, %v617_v55 }
 0x21c   : > { %656 = vst.msk [vmem:[%s1051_s12 + $0x70] sm:$0xff] %vm641_vm1, %v639_v56 }
 0x221   : > { %v620_v57 = vpop.f32.mrf.mxu3 }
 0x222   : > { %v640_v58 = vadd.f32 %v624_v26, %v620_v57 }
 0x224   : > { %657 = vst.msk [vmem:[%s1051_s12 + $0x78] sm:$0xff] %vm641_vm1, %v640_v58 }
 0x225 PF: > { %s18_s26 = sadd.s32 1, %s789_s26  }
 0x226   : > { %p15_p4 = scmp.ge.s32.totalorder %s18_s26, 4  }
 0x228   :  { %17 = sbr.rel (!%p15_p4) target bundleno = 2 (0x2), region = 78 }

</bundles_post_ra>
